<compile_context>
chip_gen: v7x
topology: tpu7x:2x2x1
jax: 0.10.0
libtpu: 0.0.40
codegen_flags: <defaults>
</compile_context>

<pallas_src>
import jax
import jax.numpy as jnp
from jax.experimental import pallas as pl
from jax.experimental.pallas import tpu as pltpu

VOCAB = 205 + 1          # 206 site ids
SITE_EMBED_DIM = 64
OUTPUT_DIM = SITE_EMBED_DIM + 1


def _embed_gather_kernel(idx_ref, table_ref, out_ref):
    # idx_ref:   (B_pad,) int32 in SMEM (scalar prefetch)
    # table_ref: (V, D) f32, full table resident in VMEM (constant index_map)
    # out_ref:   (TB, D) f32 output block in VMEM
    i = pl.program_id(0)
    tb = out_ref.shape[0]
    base = i * tb

    @pl.loop(0, tb)
    def _(r):
        row = idx_ref[base + r]                                   # scalar read from SMEM
        out_ref[pl.ds(r, 1), :] = table_ref[pl.ds(row, 1), :]     # (1, 64) VMEM->VMEM copy


def build_model_forward(x_site, x_floor, embed_table, *, tb_max=512):
    """x_site: (B,) or (B,1) int ids; x_floor: (B, 1) float; embed_table: (V, D) float."""
    table = jnp.asarray(embed_table, jnp.float32)   # no-op if params already f32
    v, d = table.shape

    idx = jnp.clip(x_site.reshape(-1).astype(jnp.int32), 0, v - 1)
    b = idx.shape[0]

    # Batch tile: single grid step for small batches, up to tb_max rows otherwise.
    tb = min(tb_max, ((b + 7) // 8) * 8)
    assert tb % 8 == 0, "batch tile must be a multiple of 8 (f32 sublane tiling)"
    nb = pl.cdiv(b, tb)
    b_pad = nb * tb
    if b_pad != b:
        idx = jnp.pad(idx, (0, b_pad - b))          # padded rows gather row 0, sliced off

    emb = pl.pallas_call(
        _embed_gather_kernel,
        out_shape=jax.ShapeDtypeStruct((b_pad, d), jnp.float32),
        grid_spec=pltpu.PrefetchScalarGridSpec(
            num_scalar_prefetch=1,                                       # idx -> SMEM
            grid=(nb,),
            in_specs=[pl.BlockSpec((v, d), lambda i, ids: (0, 0))],      # table resident in VMEM
            out_specs=pl.BlockSpec((tb, d), lambda i, ids: (i, 0)),
        ),
        compiler_params=pltpu.CompilerParams(
            dimension_semantics=("parallel",)),                          # megacore-shardable on v7x
    )(idx, table)

    emb = emb[:b]
    # Concat with x_floor outside the kernel keeps the kernel output lane-dense.
    # TODO(synk): for very large B, fusing the concat into a 128-lane-padded kernel
    # output could halve output-side HBM traffic; benchmark against this version.
    return jnp.concatenate([emb, x_floor.astype(jnp.float32)], axis=1)


if __name__ == "__main__":
    key = jax.random.PRNGKey(0)
    k_tab, k_site, k_floor = jax.random.split(key, 3)

    # Deterministic "parameters": embedding table (206, 64), like nn.Embedding init.
    embed_table = jax.random.normal(k_tab, (VOCAB, SITE_EMBED_DIM), dtype=jnp.float32)

    # Small example inputs: B=20 exercises batch padding.
    B = 20
    x_site = jax.random.randint(k_site, (B,), 0, VOCAB, dtype=jnp.int32)
    x_floor = jax.random.normal(k_floor, (B, 1), dtype=jnp.float32)

    # Reference in plain JAX (embedding lookup + concat); the VMEM gather is bit-exact f32.
    ref = jnp.concatenate([embed_table[x_site], x_floor], axis=1)

    # Default path: single grid step (TB = padded batch).
    out = jax.block_until_ready(build_model_forward(x_site, x_floor, embed_table))
    assert out.shape == (B, OUTPUT_DIM), out.shape
    assert jnp.allclose(out, ref, atol=1e-6, rtol=1e-6)

    # Multi-tile path: exercises the grid + resident-table reuse (TB=8, 3 grid steps).
    out_tiled = jax.block_until_ready(
        build_model_forward(x_site, x_floor, embed_table, tb_max=8))
    assert jnp.allclose(out_tiled, ref, atol=1e-6, rtol=1e-6)

    print("KERNEL_OK")
</pallas_src>

<mosaic_0001>
module attributes {stable_mosaic.version = 11 : i64} {
  func.func @_embed_gather_kernel(%arg0: i32, %arg1: memref<24xi32, #tpu.memory_space<smem>>, %arg2: memref<206x64xf32, #tpu.memory_space<vmem>>, %arg3: memref<24x64xf32, #tpu.memory_space<vmem>>) attributes {dimension_semantics = [#tpu.dimension_semantics<parallel>], iteration_bounds = array<i64: 1>, scalar_prefetch = 1 : i64, scratch_operands = 0 : i64, tpu.core_type = #tpu.core_type<tc>, window_params = [{pipeline_mode = #tpu.pipeline_mode<synchronous>, transform_indices = @transform_0, window_bounds = array<i64: 206, 64>}, {transform_indices = @transform_1, window_bounds = array<i64: 24, 64>}]} {
    %c24_i32 = arith.constant 24 : i32
    %0 = arith.muli %arg0, %c24_i32 : i32
    %c0_i32 = arith.constant 0 : i32
    %c24_i32_0 = arith.constant 24 : i32
    %1 = arith.addi %c0_i32, %c24_i32_0 : i32
    %c1_i32 = arith.constant 1 : i32
    scf.for %arg4 = %c0_i32 to %1 step %c1_i32  : i32 {
      %c1_i32_2 = arith.constant 1 : i32
      %2 = arith.muli %arg4, %c1_i32_2 : i32
      %c0_i32_3 = arith.constant 0 : i32
      %3 = arith.addi %c0_i32_3, %2 : i32
      %4 = arith.addi %0, %3 : i32
      %5 = arith.index_cast %4 : i32 to index
      %6 = memref.load %arg1[%5] : memref<24xi32, #tpu.memory_space<smem>>
      %7 = arith.index_cast %6 : i32 to index
      %c0 = arith.constant 0 : index
      %8 = vector.load %arg2[%7, %c0] : memref<206x64xf32, #tpu.memory_space<vmem>>, vector<1x64xf32>
      %9 = arith.index_cast %3 : i32 to index
      %c0_4 = arith.constant 0 : index
      %10 = vector.load %arg3[%9, %c0_4] : memref<24x64xf32, #tpu.memory_space<vmem>>, vector<1x64xf32>
      tpu.vector_store %arg3[%9, %c0_4], %8 {strides = array<i32>} : memref<24x64xf32, #tpu.memory_space<vmem>>, vector<1x64xf32>,
    }
    %c24_i32_1 = arith.constant 24 : i32
    return
  }
  func.func @transform_0(%arg0: i32, %arg1: memref<24xi32, #tpu.memory_space<smem>>) -> (i32, i32) {
    %c0_i32 = arith.constant 0 : i32
    %c0_i32_0 = arith.constant 0 : i32
    %c0_i32_1 = arith.constant 0 : i32
    return %c0_i32, %c0_i32_0 : i32, i32
  }
  func.func @transform_1(%arg0: i32, %arg1: memref<24xi32, #tpu.memory_space<smem>>) -> (i32, i32) {
    %c0_i32 = arith.constant 0 : i32
    %c0_i32_0 = arith.constant 0 : i32
    return %arg0, %c0_i32 : i32, i32
  }
}

</mosaic_0001>

<bundles_post_ra>
// kernel: tpu_custom_call.1
= control target key start
LH: loop header
LB: loop body
LE: loop exit
PB: predicated region body
PF: predicated region fallthrough
CT: control target
= control target key end

     0   :  { %s148_s0 = inlined_call_operand.vmem [shape: s32[24], index: 0, kind: input, shape index: {}]   ;;  %s149_s1 = inlined_call_operand.vmem [shape: f32[206,64], index: 1, kind: input, shape index: {}]   ;;  %s150_s2 = inlined_call_operand.hbm [shape: f32[24,64], index: 2, kind: output, shape index: {}]  }
   0x1   :  { %s7_s11 = sshll.u32 %s148_s0, 4  ;;  %s8_s11 = int_to_ptr.vmem [resolvable:$true] %s7_s11 }
   0x2   :  { %s65_s12 = scalar_lea.vmem %s8_s11, 16  ;;  %p70_p1 = scmp.lt.s32.totalorder %s8_s11, %s8_s11 }
   0x3   :  { %p66_p0 = scmp.ne.s32.totalorder %s8_s11, %s65_s12  ;;  %p71_p2 = scmp.lt.s32.totalorder %s65_s12, %s65_s12 }
   0x5   :  { %p72_p3 = por %p71_p2, %p70_p1 }
   0x7   :  { %p73_p4 = pnand %p72_p3, %p66_p0 }
   0x9   :  { %76 = shalt.err (!%p73_p4)  }
   0xa   :  { %s111_s13 = smov [#allocation3]  }
   0xb   :  { %10 = dma.vmem_to_smem %s8_s11, 16, %s111_s13, [#allocation2] }
   0xc   :  { %103 = dma.done.wait [#allocation2], 16 }
   0xd   :  { %104 = vsyncadd [#allocation2], 4294967280 }
   0xe   :  { %12 = sfence }
   0xf   :  { %13 = vsyncpa [#allocation5], 0  ;;  %s107_s14 = smov 0  }
  0x10 LB: > { %s24_s15 = sld [smem:[#allocation3 + %s109_s14]]  ;;  %vm28_vm0 = vcmask 516096   ;;  %s27_s18 = scalar_lea.vmem [#allocation4], %s109_s14  ;;  %s109_s14 = sphi %s107_s14, %s22_s14  }
  0x11   : > { %s22_s14 = sadd.s32 1, %s109_s14  }
  0x12   : > { %p19_p5 = scmp.ge.s32.totalorder %s22_s14, 24  }
  0x13   :  { %s112_s19 = smov (%p19_p5), [#allocation4]  }
  0x14   :  { %21 = sbr.rel (!%p19_p5) target bundleno = 16 (0x10), region = 33  ;;  %s35_s20 = sshll.u32 (%p19_p5), %s112_s19, 4  ;;  %s36_s20 = int_to_ptr.vmem [resolvable:$true] %s35_s20 }
  0x15   :  { %s77_s21 = scalar_lea.vmem (%p19_p5), %s36_s20, 384  ;;  %p82_p7 = scmp.lt.s32.totalorder (%p19_p5), %s36_s20, %s36_s20 }
  0x16   : > { %s25_s17 = scalar_lea.vmem %s149_s1, %s24_s15  ;;  %p78_p6 = scmp.ne.s32.totalorder (%p19_p5), %s36_s20, %s77_s21 }
  0x17   : > { %v26_v0 = vld [vmem:[%s25_s17] sm:$0x1]  ;;  %p83_p8 = scmp.lt.s32.totalorder (%p19_p5), %s77_s21, %s77_s21 }
  0x18   : > { %29 = vst.msk [vmem:[%s27_s18] sm:$0x1] %vm28_vm0, %v26_v0 }
  0x19   :  { %p84_p9 = por (%p19_p5), %p83_p8, %p82_p7 }
  0x1b   :  { %p85_p10 = pnand %p84_p9, %p78_p6 }
  0x1d   :  { %88 = shalt.err (!%p85_p10)
}
  0x1e   :  { %s89_s24 = scalar_lea.hbm %s150_s2, 384 }
  0x1f   :  { %p90_p11 = scmp.ne.s32.totalorder %s150_s2, %s89_s24  ;;  %p93_p12 = scmp.lt.u32.totalorder %s89_s24, %s150_s2 }
  0x21   :  { %p95_p13 = pnand %p93_p12, %p90_p11 }
  0x23   :  { %98 = shalt.err (!%p95_p13)
}
  0x24   :  { %s113_s1 = smov 128   ;;  %s114_s29 = smov 8  }
  0x25   :  { %41 = dma.vmem_to_hbm [thread:$0]  %s36_s20, 384, %s150_s2, [#allocation5], %s113_s1, %s113_s1, %s114_s29  }
  0x26   :  { %105 = dma.done.wait [#allocation5], 384  }
  0x27   :  { %106 = vsyncadd [#allocation5], 4294966912 }
  0x28   :  { %45 = vsyncpa [#allocation5], 1 }

</bundles_post_ra>
